<compile_context>
chip_gen: v6e
topology: v6e:2x2x1
jax: 0.10.0
libtpu: 0.0.40
codegen_flags: <defaults>
</compile_context>

<pallas_src>
import jax
import jax.numpy as jnp
from jax.experimental import pallas as pl
from jax.experimental.pallas import tpu as pltpu

# ---- "config" -----------------------------------------------------------
HIDDEN = 32                      # config.hidden_dim
SEM = 8                          # config.sem_dim_size
EMB = 16                         # config.emb_dim
VOCAB = 128                      # config.vocab_size
ENC_OP = 2 * SEM + 2 * HIDDEN    # encoder_op_size = 80
ENC_P = 128                      # ENC_OP zero-padded to lane width
B = 2                            # batch
T_K = 8                          # encoder sequence length

# -- packed matrix-weight slab: (MAT_ROWS, 128), all block starts multiple of 8
R_XC,   N_XC   = 0,   ENC_OP + EMB        # x_context weight      (96, 16)
R_LSTM, N_LSTM = 96,  EMB + HIDDEN        # [w_ih; w_hh]          (48, 128)
R_DP,   N_DP   = 144, 2 * HIDDEN          # decode_proj           (64, 64)
R_O1,   N_O1   = 208, HIDDEN + ENC_P      # out1 [h | c_t_pad]    (160, 32)
R_O2,   N_O2   = 368, HIDDEN              # out2                  (32, 128)
MAT_ROWS = 400

# -- packed bias/vector slab: (16, 128), one row per vector
(V_BXC, V_BLSTM, V_BDP, V_V, V_BO1, V_BO2,
 V_PGCT, V_PGS, V_PGX, V_BPG) = range(10)
VEC_ROWS = 16

# -- packed per-step state slab: (B, 256)
S_XC = 0                                   # cat(c_t_1, y_embd)  width 96
S_H0 = ENC_OP + EMB                        # h0                  width 32
S_C0 = S_H0 + HIDDEN                       # c0                  width 32
S_MASK = S_C0 + HIDDEN                     # enc_padding_mask    width 8
STATE_W = 256

# -- packed output slab: (B, 384)
O_FINAL = 0                                # final_dist   128
O_H = O_FINAL + VOCAB                      # h_t          32
O_C = O_H + HIDDEN                         # c (lstm)     32
O_CT = O_C + HIDDEN                        # c_t (padded) 128
O_ATTN = O_CT + ENC_P                      # attn_dist    8
O_PGEN = O_ATTN + T_K                      # p_gen        1
OUT_W = 384


# ---- the Pallas kernel --------------------------------------------------
def decoder_kernel(mat_ref, vec_ref, state_ref, ext_ref, enc_feat_ref, enc_ref,
                   out_ref):
    f32 = jnp.float32
    H = HIDDEN

    # bias / vector rows (one 2-vreg load, sliced in-register)
    vecs = vec_ref[...]                                     # (16, 128)
    bxc    = vecs[V_BXC:V_BXC + 1, 0:EMB]
    b_lstm = vecs[V_BLSTM:V_BLSTM + 1, :]                   # b_ih + b_hh
    bdp    = vecs[V_BDP:V_BDP + 1, 0:2 * H]
    v_w    = vecs[V_V:V_V + 1, 0:2 * H]
    bo1    = vecs[V_BO1:V_BO1 + 1, 0:H]
    bo2    = vecs[V_BO2:V_BO2 + 1, :]
    wpg_ct = vecs[V_PGCT:V_PGCT + 1, :]                     # padded to 128
    wpg_s  = vecs[V_PGS:V_PGS + 1, 0:2 * H]
    wpg_x  = vecs[V_PGX:V_PGX + 1, 0:EMB]
    bpg    = vecs[V_BPG:V_BPG + 1, 0:1]

    # per-step state slab
    xc_in = state_ref[:, S_XC:S_XC + N_XC]                  # (B,96) cat(c_t_1, y_embd)
    h0    = state_ref[:, S_H0:S_H0 + H]                     # (B,32)
    c0    = state_ref[:, S_C0:S_C0 + H]                     # (B,32)
    mask  = state_ref[:, S_MASK:S_MASK + T_K]               # (B,8)

    # --- x = x_context(cat(c_t_1, y_embd)) : one fused matmul ---
    x = (jnp.dot(xc_in, mat_ref[R_XC:R_XC + N_XC, 0:EMB],
                 preferred_element_type=f32) + bxc)         # (B,16)

    # --- single-step LSTM, PyTorch gate order (i,f,g,o): one fused matmul ---
    xh = jnp.concatenate([x, h0], axis=-1)                  # (B,48)
    gates = (jnp.dot(xh, mat_ref[R_LSTM:R_LSTM + N_LSTM, :],
                     preferred_element_type=f32) + b_lstm)  # (B,128)
    i_g = jax.nn.sigmoid(gates[:, 0 * H:1 * H])
    f_g = jax.nn.sigmoid(gates[:, 1 * H:2 * H])
    g_g = jnp.tanh(gates[:, 2 * H:3 * H])
    o_g = jax.nn.sigmoid(gates[:, 3 * H:4 * H])
    c_new = f_g * c0 + i_g * g_g                            # (B,32)
    h_new = o_g * jnp.tanh(c_new)                           # (B,32) == lstm_out
    s_t_hat = jnp.concatenate([h_new, c_new], axis=-1)      # (B,64)

    # --- attention (enc_feat = W_h(encoder_outputs) precomputed outside) ---
    dec_fea = (jnp.dot(s_t_hat, mat_ref[R_DP:R_DP + N_DP, 0:2 * H],
                       preferred_element_type=f32) + bdp)   # (B,64)
    e = jnp.tanh(enc_feat_ref[...] + dec_fea[:, None, :])   # (B,T,64)
    scores = jnp.sum(e * v_w[:, None, :], axis=-1)          # v(e) -> (B,T)

    m1 = jnp.max(scores, axis=-1, keepdims=True)
    ex = jnp.exp(scores - m1)
    sm = ex / jnp.sum(ex, axis=-1, keepdims=True)
    attn_masked = sm * mask
    attn = attn_masked / (jnp.sum(attn_masked, axis=-1, keepdims=True) + 1e-12)

    # c_t = bmm(attn, encoder_outputs)   (lane-padded to 128)
    enc = enc_ref[...]                                      # (B,T,128)
    c_t = jnp.sum(enc * attn[:, :, None], axis=1)           # (B,128)

    # --- p_gen gate: keep the width-1 projection off the MXU (VPU + reduce) ---
    pg_logit = (jnp.sum(c_t * wpg_ct, axis=-1, keepdims=True)
                + jnp.sum(s_t_hat * wpg_s, axis=-1, keepdims=True)
                + jnp.sum(x * wpg_x, axis=-1, keepdims=True)
                + bpg)                                      # (B,1)
    p_gen = jax.nn.sigmoid(pg_logit)

    # --- vocabulary distribution: out2(out1(cat(lstm_out, c_t))) ---
    o1 = (jnp.dot(jnp.concatenate([h_new, c_t], axis=-1),
                  mat_ref[R_O1:R_O1 + N_O1, 0:H],
                  preferred_element_type=f32) + bo1)        # (B,32)
    o2 = (jnp.dot(o1, mat_ref[R_O2:R_O2 + N_O2, :],
                  preferred_element_type=f32) + bo2)        # (B,128)
    m2 = jnp.max(o2, axis=-1, keepdims=True)
    e2 = jnp.exp(o2 - m2)
    vocab = e2 / jnp.sum(e2, axis=-1, keepdims=True)

    # --- final_dist = (p_gen*vocab).scatter_add(1, enc_ext, (1-p_gen)*attn) ---
    ids = ext_ref[...]                                      # (B,T) int32
    bsz, t_k = ids.shape
    iota_v = jax.lax.broadcasted_iota(jnp.int32, (bsz, t_k, VOCAB), 2)
    onehot = (ids[:, :, None] == iota_v).astype(f32)        # (B,T,V)
    attn_pg = (1.0 - p_gen) * attn
    final = p_gen * vocab + jnp.sum(onehot * attn_pg[:, :, None], axis=1)

    # --- single lane-dense output slab (one unmasked writeback DMA) ---
    pad = jnp.zeros((bsz, OUT_W - (O_PGEN + 1)), f32)
    out_ref[...] = jnp.concatenate(
        [final, h_new, c_new, c_t, attn, p_gen, pad], axis=-1)


# ---- host-side packing ---------------------------------------------------
def pack_params(params):
    (wxc_c, wxc_e, bxc, w_ih, b_ih, w_hh, b_hh,
     wh, wdp_h, wdp_c, bdp, v_w,
     wpg_ct, wpg_h, wpg_c, wpg_x, bpg,
     wo1_h, wo1_c, bo1, wo2, bo2) = params

    def pad_cols(mat):
        return jnp.pad(mat, ((0, 0), (0, 128 - mat.shape[1])))

    mat = jnp.concatenate([
        pad_cols(jnp.concatenate([wxc_c, wxc_e], axis=0)),                    # R_XC
        jnp.concatenate([w_ih, w_hh], axis=0),                                # R_LSTM
        pad_cols(jnp.concatenate([wdp_h, wdp_c], axis=0)),                    # R_DP
        pad_cols(jnp.concatenate(
            [wo1_h, jnp.pad(wo1_c, ((0, ENC_P - ENC_OP), (0, 0)))], axis=0)), # R_O1
        wo2,                                                                  # R_O2
    ], axis=0).astype(jnp.float32)
    assert mat.shape == (MAT_ROWS, 128)

    vec = jnp.zeros((VEC_ROWS, 128), jnp.float32)
    vec = vec.at[V_BXC, 0:EMB].set(bxc[0])
    vec = vec.at[V_BLSTM, :].set((b_ih + b_hh)[0])          # pre-summed LSTM bias
    vec = vec.at[V_BDP, 0:2 * HIDDEN].set(bdp[0])
    vec = vec.at[V_V, 0:2 * HIDDEN].set(v_w[0])
    vec = vec.at[V_BO1, 0:HIDDEN].set(bo1[0])
    vec = vec.at[V_BO2, :].set(bo2[0])
    vec = vec.at[V_PGCT, 0:ENC_OP].set(wpg_ct[:, 0])
    vec = vec.at[V_PGS, 0:2 * HIDDEN].set(
        jnp.concatenate([wpg_h, wpg_c], axis=0)[:, 0])
    vec = vec.at[V_PGX, 0:EMB].set(wpg_x[:, 0])
    vec = vec.at[V_BPG, 0:1].set(bpg[0])
    return mat, vec


def prepare_inputs(params, y_embd, c_t_1, h0, c0, enc_out, enc_mask):
    wh = params[7]
    # step-invariant encoder projection hoisted out of the per-step kernel
    enc_feat = jnp.einsum('btn,nm->btm', enc_out, wh)                    # (B,T,2H)
    enc_pad = jnp.pad(enc_out, ((0, 0), (0, 0), (0, ENC_P - ENC_OP)))    # (B,T,128)
    state = jnp.zeros((B, STATE_W), jnp.float32)
    state = state.at[:, S_XC:S_XC + ENC_OP].set(c_t_1)
    state = state.at[:, S_XC + ENC_OP:S_XC + ENC_OP + EMB].set(y_embd)
    state = state.at[:, S_H0:S_H0 + HIDDEN].set(h0)
    state = state.at[:, S_C0:S_C0 + HIDDEN].set(c0)
    state = state.at[:, S_MASK:S_MASK + T_K].set(enc_mask)
    return state, enc_feat, enc_pad


# ---- wrapper -------------------------------------------------------------
def run_decoder(mat_w, vec_w, state, enc_ext, enc_feat, enc_pad):
    vmem = pl.BlockSpec(memory_space=pltpu.MemorySpace.VMEM)
    slab = pl.pallas_call(
        decoder_kernel,
        out_shape=jax.ShapeDtypeStruct((B, OUT_W), jnp.float32),
        in_specs=[vmem] * 6,
        out_specs=vmem,
    )(mat_w, vec_w, state, enc_ext, enc_feat, enc_pad)
    final  = slab[:, O_FINAL:O_FINAL + VOCAB]
    h_t    = slab[:, O_H:O_H + HIDDEN]
    c_lstm = slab[:, O_C:O_C + HIDDEN]
    c_t    = slab[:, O_CT:O_CT + ENC_OP]
    attn   = slab[:, O_ATTN:O_ATTN + T_K]
    p_gen  = slab[:, O_PGEN:O_PGEN + 1]
    return final, h_t, c_lstm, c_t, attn, p_gen


# ---- pure-JAX reference (mirrors the PyTorch forward) --------------------
def decoder_ref(params, y_embd, c_t_1, h0, c0, enc_out, enc_mask, enc_ext):
    (wxc_c, wxc_e, bxc, w_ih, b_ih, w_hh, b_hh,
     wh, wdp_h, wdp_c, bdp, v_w,
     wpg_ct, wpg_h, wpg_c, wpg_x, bpg,
     wo1_h, wo1_c, bo1, wo2, bo2) = params
    H = HIDDEN
    x = c_t_1 @ wxc_c + y_embd @ wxc_e + bxc
    gates = x @ w_ih + b_ih + h0 @ w_hh + b_hh
    i_g = jax.nn.sigmoid(gates[:, 0 * H:1 * H])
    f_g = jax.nn.sigmoid(gates[:, 1 * H:2 * H])
    g_g = jnp.tanh(gates[:, 2 * H:3 * H])
    o_g = jax.nn.sigmoid(gates[:, 3 * H:4 * H])
    c_new = f_g * c0 + i_g * g_g
    h_new = o_g * jnp.tanh(c_new)
    enc_feat = (enc_out.reshape(B * T_K, ENC_OP) @ wh).reshape(B, T_K, 2 * H)
    dec_fea = h_new @ wdp_h + c_new @ wdp_c + bdp
    e = jnp.tanh(enc_feat + dec_fea[:, None, :])
    scores = jnp.sum(e * v_w, axis=-1)
    attn_dist_ = jax.nn.softmax(scores, axis=-1) * enc_mask
    attn_dist = attn_dist_ / (jnp.sum(attn_dist_, axis=-1, keepdims=True) + 1e-12)
    c_t = jnp.einsum("bt,btn->bn", attn_dist, enc_out)
    p_gen = jax.nn.sigmoid(c_t @ wpg_ct + h_new @ wpg_h + c_new @ wpg_c
                           + x @ wpg_x + bpg)
    o1 = h_new @ wo1_h + c_t @ wo1_c + bo1
    vocab_dist = jax.nn.softmax(o1 @ wo2 + bo2, axis=-1)
    vocab_dist_ = p_gen * vocab_dist
    attn_pg = (1.0 - p_gen) * attn_dist
    onehot = jax.nn.one_hot(enc_ext, VOCAB, dtype=jnp.float32)
    final = vocab_dist_ + jnp.einsum("bt,btv->bv", attn_pg, onehot)
    return final, h_new, c_new, c_t, attn_dist, p_gen


# ---- deterministic parameter init ---------------------------------------
def init_params(key):
    def nrm(k, shape, scale=0.1):
        return scale * jax.random.normal(k, shape, dtype=jnp.float32)
    ks = jax.random.split(key, 24)
    wxc_c = nrm(ks[0], (ENC_OP, EMB)); wxc_e = nrm(ks[1], (EMB, EMB)); bxc = nrm(ks[2], (1, EMB))
    w_ih = nrm(ks[3], (EMB, 4 * HIDDEN)); b_ih = nrm(ks[4], (1, 4 * HIDDEN))
    w_hh = nrm(ks[5], (HIDDEN, 4 * HIDDEN)); b_hh = nrm(ks[6], (1, 4 * HIDDEN))
    wh = nrm(ks[7], (ENC_OP, 2 * HIDDEN))
    wdp_h = nrm(ks[8], (HIDDEN, 2 * HIDDEN)); wdp_c = nrm(ks[9], (HIDDEN, 2 * HIDDEN))
    bdp = nrm(ks[10], (1, 2 * HIDDEN)); v_w = nrm(ks[11], (1, 2 * HIDDEN))
    wpg_ct = nrm(ks[12], (ENC_OP, 1)); wpg_h = nrm(ks[13], (HIDDEN, 1))
    wpg_c = nrm(ks[14], (HIDDEN, 1)); wpg_x = nrm(ks[15], (EMB, 1)); bpg = nrm(ks[16], (1, 1))
    wo1_h = nrm(ks[17], (HIDDEN, HIDDEN)); wo1_c = nrm(ks[18], (ENC_OP, HIDDEN))
    bo1 = nrm(ks[19], (1, HIDDEN))
    wo2 = nrm(ks[20], (HIDDEN, VOCAB)); bo2 = nrm(ks[21], (1, VOCAB))
    emb_matrix = nrm(ks[22], (VOCAB, EMB), scale=1.0)  # nn.Embedding weight
    params = (wxc_c, wxc_e, bxc, w_ih, b_ih, w_hh, b_hh,
              wh, wdp_h, wdp_c, bdp, v_w,
              wpg_ct, wpg_h, wpg_c, wpg_x, bpg,
              wo1_h, wo1_c, bo1, wo2, bo2)
    return params, emb_matrix


if __name__ == "__main__":
    key = jax.random.PRNGKey(0)
    params, emb_matrix = init_params(key)

    dks = jax.random.split(jax.random.PRNGKey(1), 8)
    y_t_1 = jax.random.randint(dks[0], (B,), 0, VOCAB, dtype=jnp.int32)
    h0 = 0.1 * jax.random.normal(dks[1], (1, B, HIDDEN), dtype=jnp.float32)   # s_t_1[0]
    c0 = 0.1 * jax.random.normal(dks[2], (1, B, HIDDEN), dtype=jnp.float32)   # s_t_1[1]
    encoder_outputs = 0.1 * jax.random.normal(dks[3], (B, T_K, ENC_OP), dtype=jnp.float32)
    c_t_1 = 0.1 * jax.random.normal(dks[4], (B, ENC_OP), dtype=jnp.float32)
    enc_padding_mask = jnp.concatenate(
        [jnp.ones((B, T_K - 2), jnp.float32), jnp.zeros((B, 2), jnp.float32)], axis=1)
    enc_batch_extend_vocab = jax.random.randint(dks[5], (B, T_K), 0, VOCAB, dtype=jnp.int32)
    coverage = jnp.zeros((B, T_K), jnp.float32)   # unused (is_coverage=False) → passthrough

    # glue: embedding gather (data-dependent row lookup stays outside the kernel)
    y_embd = emb_matrix[y_t_1]                    # (B, EMB)
    h0_2d, c0_2d = h0.reshape(B, HIDDEN), c0.reshape(B, HIDDEN)

    # host-side packing (done once; decode-step invariant)
    mat_w, vec_w = pack_params(params)
    state, enc_feat, enc_pad = prepare_inputs(
        params, y_embd, c_t_1, h0_2d, c0_2d, encoder_outputs, enc_padding_mask)

    outs = jax.block_until_ready(
        run_decoder(mat_w, vec_w, state, enc_batch_extend_vocab, enc_feat, enc_pad))
    final_dist, h_t, c_lstm, c_t, attn_dist, p_gen = outs
    s_t = (h_t.reshape(1, B, HIDDEN), c_lstm.reshape(1, B, HIDDEN))  # LSTM state layout
    coverage_out = coverage                       # unchanged for this flag config

    # verify against a pure-JAX reference of the same forward pass
    refs = decoder_ref(params, y_embd, c_t_1, h0_2d, c0_2d,
                       encoder_outputs, enc_padding_mask, enc_batch_extend_vocab)
    for got, want in zip(outs, refs):
        assert jnp.allclose(got, want, atol=1e-5, rtol=1e-5), "mismatch vs reference"
    # distributions should sum to ~1
    assert jnp.allclose(jnp.sum(final_dist, axis=-1), 1.0, atol=1e-4)

    print("KERNEL_OK")
</pallas_src>

<mosaic_0001>
module attributes {stable_mosaic.version = 11 : i64} {
  func.func @decoder_kernel(%arg0: memref<400x128xf32, #tpu.memory_space<vmem>>, %arg1: memref<16x128xf32, #tpu.memory_space<vmem>>, %arg2: memref<2x256xf32, #tpu.memory_space<vmem>>, %arg3: memref<2x8xi32, #tpu.memory_space<vmem>>, %arg4: memref<2x8x64xf32, #tpu.memory_space<vmem>>, %arg5: memref<2x8x128xf32, #tpu.memory_space<vmem>>, %arg6: memref<2x384xf32, #tpu.memory_space<vmem>>) attributes {dimension_semantics = [], scalar_prefetch = 0 : i64, scratch_operands = 0 : i64, tpu.core_type = #tpu.core_type<tc>} {
    %c0 = arith.constant 0 : index
    %c0_0 = arith.constant 0 : index
    %0 = vector.load %arg1[%c0, %c0_0] : memref<16x128xf32, #tpu.memory_space<vmem>>, vector<16x128xf32>
    %1 = vector.extract_strided_slice %0 {offsets = [0, 0], sizes = [1, 16], strides = [1, 1]} : vector<16x128xf32> to vector<1x16xf32>
    %2 = vector.extract_strided_slice %0 {offsets = [1, 0], sizes = [1, 128], strides = [1, 1]} : vector<16x128xf32> to vector<1x128xf32>
    %3 = vector.extract_strided_slice %0 {offsets = [2, 0], sizes = [1, 64], strides = [1, 1]} : vector<16x128xf32> to vector<1x64xf32>
    %4 = vector.extract_strided_slice %0 {offsets = [3, 0], sizes = [1, 64], strides = [1, 1]} : vector<16x128xf32> to vector<1x64xf32>
    %5 = vector.extract_strided_slice %0 {offsets = [4, 0], sizes = [1, 32], strides = [1, 1]} : vector<16x128xf32> to vector<1x32xf32>
    %6 = vector.extract_strided_slice %0 {offsets = [5, 0], sizes = [1, 128], strides = [1, 1]} : vector<16x128xf32> to vector<1x128xf32>
    %7 = vector.extract_strided_slice %0 {offsets = [6, 0], sizes = [1, 128], strides = [1, 1]} : vector<16x128xf32> to vector<1x128xf32>
    %8 = vector.extract_strided_slice %0 {offsets = [7, 0], sizes = [1, 64], strides = [1, 1]} : vector<16x128xf32> to vector<1x64xf32>
    %9 = vector.extract_strided_slice %0 {offsets = [8, 0], sizes = [1, 16], strides = [1, 1]} : vector<16x128xf32> to vector<1x16xf32>
    %10 = vector.extract_strided_slice %0 {offsets = [9, 0], sizes = [1, 1], strides = [1, 1]} : vector<16x128xf32> to vector<1x1xf32>
    %c0_1 = arith.constant 0 : index
    %c0_2 = arith.constant 0 : index
    %11 = vector.load %arg2[%c0_1, %c0_2] : memref<2x256xf32, #tpu.memory_space<vmem>>, vector<2x96xf32>
    %c0_3 = arith.constant 0 : index
    %c96 = arith.constant 96 : index
    %12 = vector.load %arg2[%c0_3, %c96] : memref<2x256xf32, #tpu.memory_space<vmem>>, vector<2x32xf32>
    %c0_4 = arith.constant 0 : index
    %c128 = arith.constant 128 : index
    %13 = vector.load %arg2[%c0_4, %c128] : memref<2x256xf32, #tpu.memory_space<vmem>>, vector<2x32xf32>
    %c0_5 = arith.constant 0 : index
    %c160 = arith.constant 160 : index
    %14 = vector.load %arg2[%c0_5, %c160] : memref<2x256xf32, #tpu.memory_space<vmem>>, vector<2x8xf32>
    %c0_6 = arith.constant 0 : index
    %c0_7 = arith.constant 0 : index
    %15 = vector.load %arg0[%c0_6, %c0_7] : memref<400x128xf32, #tpu.memory_space<vmem>>, vector<96x16xf32>
    %cst = arith.constant dense<0.000000e+00> : vector<2x16xf32>
    %16 = tpu.matmul %11, %15, %cst {dimension_numbers = #tpu.dot_dimension_numbers<[1], [0], [0], [1], [0, 0, 1, 1], [], []>} : vector<2x96xf32>, vector<96x16xf32>, vector<2x16xf32> -> vector<2x16xf32>
    %17 = vector.broadcast %1 : vector<1x16xf32> to vector<2x16xf32>
    %18 = arith.addf %16, %17 : vector<2x16xf32>
    %19 = tpu.concatenate %18, %12 in 1 : vector<2x16xf32>, vector<2x32xf32> -> vector<2x48xf32>
    %c96_8 = arith.constant 96 : index
    %c0_9 = arith.constant 0 : index
    %20 = vector.load %arg0[%c96_8, %c0_9] : memref<400x128xf32, #tpu.memory_space<vmem>>, vector<48x128xf32>
    %cst_10 = arith.constant dense<0.000000e+00> : vector<2x128xf32>
    %21 = tpu.matmul %19, %20, %cst_10 {dimension_numbers = #tpu.dot_dimension_numbers<[1], [0], [0], [1], [0, 0, 1, 1], [], []>} : vector<2x48xf32>, vector<48x128xf32>, vector<2x128xf32> -> vector<2x128xf32>
    %22 = vector.broadcast %2 : vector<1x128xf32> to vector<2x128xf32>
    %23 = arith.addf %21, %22 : vector<2x128xf32>
    %24 = vector.extract_strided_slice %23 {offsets = [0, 0], sizes = [2, 32], strides = [1, 1]} : vector<2x128xf32> to vector<2x32xf32>
    %25 = arith.negf %24 : vector<2x32xf32>
    %26 = math.exp %25 : vector<2x32xf32>
    %cst_11 = arith.constant 1.000000e+00 : f32
    %27 = vector.broadcast %cst_11 : f32 to vector<2x32xf32>
    %28 = arith.addf %27, %26 : vector<2x32xf32>
    %29 = arith.divf %27, %28 : vector<2x32xf32>
    %30 = vector.extract_strided_slice %23 {offsets = [0, 32], sizes = [2, 32], strides = [1, 1]} : vector<2x128xf32> to vector<2x32xf32>
    %31 = arith.negf %30 : vector<2x32xf32>
    %32 = math.exp %31 : vector<2x32xf32>
    %cst_12 = arith.constant 1.000000e+00 : f32
    %33 = vector.broadcast %cst_12 : f32 to vector<2x32xf32>
    %34 = arith.addf %33, %32 : vector<2x32xf32>
    %35 = arith.divf %33, %34 : vector<2x32xf32>
    %36 = vector.extract_strided_slice %23 {offsets = [0, 64], sizes = [2, 32], strides = [1, 1]} : vector<2x128xf32> to vector<2x32xf32>
    %37 = math.tanh %36 : vector<2x32xf32>
    %38 = vector.extract_strided_slice %23 {offsets = [0, 96], sizes = [2, 32], strides = [1, 1]} : vector<2x128xf32> to vector<2x32xf32>
    %39 = arith.negf %38 : vector<2x32xf32>
    %40 = math.exp %39 : vector<2x32xf32>
    %cst_13 = arith.constant 1.000000e+00 : f32
    %41 = vector.broadcast %cst_13 : f32 to vector<2x32xf32>
    %42 = arith.addf %41, %40 : vector<2x32xf32>
    %43 = arith.divf %41, %42 : vector<2x32xf32>
    %44 = arith.mulf %35, %13 : vector<2x32xf32>
    %45 = arith.mulf %29, %37 : vector<2x32xf32>
    %46 = arith.addf %44, %45 : vector<2x32xf32>
    %47 = math.tanh %46 : vector<2x32xf32>
    %48 = arith.mulf %43, %47 : vector<2x32xf32>
    %49 = tpu.concatenate %48, %46 in 1 : vector<2x32xf32>, vector<2x32xf32> -> vector<2x64xf32>
    %c144 = arith.constant 144 : index
    %c0_14 = arith.constant 0 : index
    %50 = vector.load %arg0[%c144, %c0_14] : memref<400x128xf32, #tpu.memory_space<vmem>>, vector<64x64xf32>
    %cst_15 = arith.constant dense<0.000000e+00> : vector<2x64xf32>
    %51 = tpu.matmul %49, %50, %cst_15 {dimension_numbers = #tpu.dot_dimension_numbers<[1], [0], [0], [1], [0, 0, 1, 1], [], []>} : vector<2x64xf32>, vector<64x64xf32>, vector<2x64xf32> -> vector<2x64xf32>
    %52 = vector.broadcast %3 : vector<1x64xf32> to vector<2x64xf32>
    %53 = arith.addf %51, %52 : vector<2x64xf32>
    %c0_16 = arith.constant 0 : index
    %c0_17 = arith.constant 0 : index
    %c0_18 = arith.constant 0 : index
    %54 = vector.load %arg4[%c0_16, %c0_17, %c0_18] : memref<2x8x64xf32, #tpu.memory_space<vmem>>, vector<2x8x64xf32>
    %55 = vector.shape_cast %53 : vector<2x64xf32> to vector<2x1x64xf32>
    %56 = vector.broadcast %55 : vector<2x1x64xf32> to vector<2x8x64xf32>
    %57 = arith.addf %54, %56 : vector<2x8x64xf32>
    %58 = math.tanh %57 : vector<2x8x64xf32>
    %59 = vector.shape_cast %4 : vector<1x64xf32> to vector<1x1x64xf32>
    %60 = vector.broadcast %59 : vector<1x1x64xf32> to vector<2x8x64xf32>
    %61 = arith.mulf %58, %60 : vector<2x8x64xf32>
    %cst_19 = arith.constant dense<0.000000e+00> : vector<2x8xf32>
    %62 = vector.multi_reduction <add>, %61, %cst_19 [2] : vector<2x8x64xf32> to vector<2x8xf32>
    %cst_20 = arith.constant dense<0xFF800000> : vector<2xf32>
    %63 = vector.multi_reduction <maximumf>, %62, %cst_20 [1] : vector<2x8xf32> to vector<2xf32>
    %64 = vector.shape_cast %63 : vector<2xf32> to vector<2x1xf32>
    %65 = vector.broadcast %64 : vector<2x1xf32> to vector<2x8xf32>
    %66 = arith.subf %62, %65 : vector<2x8xf32>
    %67 = math.exp %66 : vector<2x8xf32>
    %cst_21 = arith.constant dense<0.000000e+00> : vector<2xf32>
    %68 = vector.multi_reduction <add>, %67, %cst_21 [1] : vector<2x8xf32> to vector<2xf32>
    %69 = vector.shape_cast %68 : vector<2xf32> to vector<2x1xf32>
    %70 = vector.broadcast %69 : vector<2x1xf32> to vector<2x8xf32>
    %71 = arith.divf %67, %70 : vector<2x8xf32>
    %72 = arith.mulf %71, %14 : vector<2x8xf32>
    %cst_22 = arith.constant dense<0.000000e+00> : vector<2xf32>
    %73 = vector.multi_reduction <add>, %72, %cst_22 [1] : vector<2x8xf32> to vector<2xf32>
    %74 = vector.shape_cast %73 : vector<2xf32> to vector<2x1xf32>
    %cst_23 = arith.constant 9.99999996E-13 : f32
    %75 = vector.broadcast %cst_23 : f32 to vector<2x1xf32>
    %76 = arith.addf %74, %75 : vector<2x1xf32>
    %77 = vector.broadcast %76 : vector<2x1xf32> to vector<2x8xf32>
    %78 = arith.divf %72, %77 : vector<2x8xf32>
    %c0_24 = arith.constant 0 : index
    %c0_25 = arith.constant 0 : index
    %c0_26 = arith.constant 0 : index
    %79 = vector.load %arg5[%c0_24, %c0_25, %c0_26] : memref<2x8x128xf32, #tpu.memory_space<vmem>>, vector<2x8x128xf32>
    %80 = vector.shape_cast %78 : vector<2x8xf32> to vector<2x8x1xf32>
    %81 = vector.broadcast %80 : vector<2x8x1xf32> to vector<2x8x128xf32>
    %82 = arith.mulf %79, %81 : vector<2x8x128xf32>
    %cst_27 = arith.constant dense<0.000000e+00> : vector<2x128xf32>
    %83 = vector.multi_reduction <add>, %82, %cst_27 [1] : vector<2x8x128xf32> to vector<2x128xf32>
    %84 = vector.broadcast %7 : vector<1x128xf32> to vector<2x128xf32>
    %85 = arith.mulf %83, %84 : vector<2x128xf32>
    %cst_28 = arith.constant dense<0.000000e+00> : vector<2xf32>
    %86 = vector.multi_reduction <add>, %85, %cst_28 [1] : vector<2x128xf32> to vector<2xf32>
    %87 = vector.shape_cast %86 : vector<2xf32> to vector<2x1xf32>
    %88 = vector.broadcast %8 : vector<1x64xf32> to vector<2x64xf32>
    %89 = arith.mulf %49, %88 : vector<2x64xf32>
    %cst_29 = arith.constant dense<0.000000e+00> : vector<2xf32>
    %90 = vector.multi_reduction <add>, %89, %cst_29 [1] : vector<2x64xf32> to vector<2xf32>
    %91 = vector.shape_cast %90 : vector<2xf32> to vector<2x1xf32>
    %92 = arith.addf %87, %91 : vector<2x1xf32>
    %93 = vector.broadcast %9 : vector<1x16xf32> to vector<2x16xf32>
    %94 = arith.mulf %18, %93 : vector<2x16xf32>
    %cst_30 = arith.constant dense<0.000000e+00> : vector<2xf32>
    %95 = vector.multi_reduction <add>, %94, %cst_30 [1] : vector<2x16xf32> to vector<2xf32>
    %96 = vector.shape_cast %95 : vector<2xf32> to vector<2x1xf32>
    %97 = arith.addf %92, %96 : vector<2x1xf32>
    %98 = vector.broadcast %10 : vector<1x1xf32> to vector<2x1xf32>
    %99 = arith.addf %97, %98 : vector<2x1xf32>
    %100 = arith.negf %99 : vector<2x1xf32>
    %101 = math.exp %100 : vector<2x1xf32>
    %cst_31 = arith.constant 1.000000e+00 : f32
    %102 = vector.broadcast %cst_31 : f32 to vector<2x1xf32>
    %103 = arith.addf %102, %101 : vector<2x1xf32>
    %104 = arith.divf %102, %103 : vector<2x1xf32>
    %105 = tpu.concatenate %48, %83 in 1 : vector<2x32xf32>, vector<2x128xf32> -> vector<2x160xf32>
    %c208 = arith.constant 208 : index
    %c0_32 = arith.constant 0 : index
    %106 = vector.load %arg0[%c208, %c0_32] : memref<400x128xf32, #tpu.memory_space<vmem>>, vector<160x32xf32>
    %cst_33 = arith.constant dense<0.000000e+00> : vector<2x32xf32>
    %107 = tpu.matmul %105, %106, %cst_33 {dimension_numbers = #tpu.dot_dimension_numbers<[1], [0], [0], [1], [0, 0, 1, 1], [], []>} : vector<2x160xf32>, vector<160x32xf32>, vector<2x32xf32> -> vector<2x32xf32>
    %108 = vector.broadcast %5 : vector<1x32xf32> to vector<2x32xf32>
    %109 = arith.addf %107, %108 : vector<2x32xf32>
    %c368 = arith.constant 368 : index
    %c0_34 = arith.constant 0 : index
    %110 = vector.load %arg0[%c368, %c0_34] : memref<400x128xf32, #tpu.memory_space<vmem>>, vector<32x128xf32>
    %cst_35 = arith.constant dense<0.000000e+00> : vector<2x128xf32>
    %111 = tpu.matmul %109, %110, %cst_35 {dimension_numbers = #tpu.dot_dimension_numbers<[1], [0], [0], [1], [0, 0, 1, 1], [], []>} : vector<2x32xf32>, vector<32x128xf32>, vector<2x128xf32> -> vector<2x128xf32>
    %112 = vector.broadcast %6 : vector<1x128xf32> to vector<2x128xf32>
    %113 = arith.addf %111, %112 : vector<2x128xf32>
    %cst_36 = arith.constant dense<0xFF800000> : vector<2xf32>
    %114 = vector.multi_reduction <maximumf>, %113, %cst_36 [1] : vector<2x128xf32> to vector<2xf32>
    %115 = vector.shape_cast %114 : vector<2xf32> to vector<2x1xf32>
    %116 = vector.broadcast %115 : vector<2x1xf32> to vector<2x128xf32>
    %117 = arith.subf %113, %116 : vector<2x128xf32>
    %118 = math.exp %117 : vector<2x128xf32>
    %cst_37 = arith.constant dense<0.000000e+00> : vector<2xf32>
    %119 = vector.multi_reduction <add>, %118, %cst_37 [1] : vector<2x128xf32> to vector<2xf32>
    %120 = vector.shape_cast %119 : vector<2xf32> to vector<2x1xf32>
    %121 = vector.broadcast %120 : vector<2x1xf32> to vector<2x128xf32>
    %122 = arith.divf %118, %121 : vector<2x128xf32>
    %c0_38 = arith.constant 0 : index
    %c0_39 = arith.constant 0 : index
    %123 = vector.load %arg3[%c0_38, %c0_39] : memref<2x8xi32, #tpu.memory_space<vmem>>, vector<2x8xi32>
    %124 = tpu.iota {dimensions = array<i32: 2>} : vector<2x8x128xi32>
    %125 = vector.shape_cast %123 : vector<2x8xi32> to vector<2x8x1xi32>
    %126 = vector.broadcast %125 : vector<2x8x1xi32> to vector<2x8x128xi32>
    %127 = arith.cmpi eq, %126, %124 : vector<2x8x128xi32>
    %128 = arith.extui %127 : vector<2x8x128xi1> to vector<2x8x128xi32>
    %129 = arith.sitofp %128 : vector<2x8x128xi32> to vector<2x8x128xf32>
    %cst_40 = arith.constant 1.000000e+00 : f32
    %130 = vector.broadcast %cst_40 : f32 to vector<2x1xf32>
    %131 = arith.subf %130, %104 : vector<2x1xf32>
    %132 = vector.broadcast %131 : vector<2x1xf32> to vector<2x8xf32>
    %133 = arith.mulf %132, %78 : vector<2x8xf32>
    %134 = vector.broadcast %104 : vector<2x1xf32> to vector<2x128xf32>
    %135 = arith.mulf %134, %122 : vector<2x128xf32>
    %136 = vector.shape_cast %133 : vector<2x8xf32> to vector<2x8x1xf32>
    %137 = vector.broadcast %136 : vector<2x8x1xf32> to vector<2x8x128xf32>
    %138 = arith.mulf %129, %137 : vector<2x8x128xf32>
    %cst_41 = arith.constant dense<0.000000e+00> : vector<2x128xf32>
    %139 = vector.multi_reduction <add>, %138, %cst_41 [1] : vector<2x8x128xf32> to vector<2x128xf32>
    %140 = arith.addf %135, %139 : vector<2x128xf32>
    %cst_42 = arith.constant 0.000000e+00 : f32
    %141 = vector.broadcast %cst_42 : f32 to vector<2x55xf32>
    %142 = tpu.concatenate %140, %48, %46, %83, %78, %104, %141 in 1 : vector<2x128xf32>, vector<2x32xf32>, vector<2x32xf32>, vector<2x128xf32>, vector<2x8xf32>, vector<2x1xf32>, vector<2x55xf32> -> vector<2x384xf32>
    %c0_43 = arith.constant 0 : index
    %c0_44 = arith.constant 0 : index
    %143 = vector.load %arg6[%c0_43, %c0_44] : memref<2x384xf32, #tpu.memory_space<vmem>>, vector<2x384xf32>
    tpu.vector_store %arg6[%c0_43, %c0_44], %142 {strides = array<i32>} : memref<2x384xf32, #tpu.memory_space<vmem>>, vector<2x384xf32>,
    return
  }
}

</mosaic_0001>

<bundles_post_ra>
// kernel: tpu_custom_call.1
= control target key start
LH: loop header
LB: loop body
LE: loop exit
PB: predicated region body
PF: predicated region fallthrough
CT: control target
= control target key end

     0   :  { %11 = vsyncpa [#allocation3], 0  ;;  %s1567_s0 = inlined_call_operand.hbm [shape: f32[400,128], index: 0, kind: input, shape index: {}]   ;;  %s1568_s1 = inlined_call_operand.hbm [shape: f32[16,128], index: 1, kind: input, shape index: {}]   ;;  %s1569_s2 = inlined_call_operand.hbm [shape: f32[2,256], index: 2, kind: input, shape index: {}]   ;;  %s1570_s3 = inlined_call_operand.vmem [shape: s32[2,8], index: 3, kind: input, shape index: {}]   ;;  %s1571_s4 = inlined_call_operand.hbm [shape: f32[2,8,64], index: 4, kind: input, shape index: {}]   ;;  %s1572_s5 = inlined_call_operand.hbm [shape: f32[2,8,128], index: 5, kind: input, shape index: {}]   ;;  %s1573_s6 = inlined_call_operand.hbm [shape: f32[2,384], index: 6, kind: output, shape index: {}]  }
   0x1   :  { %12 = vsyncpa [#allocation6], 0 }
   0x2   :  { %13 = vsyncpa [#allocation9], 0 }
   0x3   :  { %14 = vsyncpa [#allocation4], 0  ;;  %s1287_s21 = smov [#allocation5]   ;;  %s1288_s23 = smov [#allocation8]  }
   0x4   :  { %s32_s22 = sshll.u32 %s1287_s21, 4  ;;  %s56_s24 = sshll.u32 %s1288_s23, 4  ;;  %s33_s22 = int_to_ptr.vmem [resolvable:$true] %s32_s22  ;;  %s57_s24 = int_to_ptr.vmem [resolvable:$true] %s56_s24 }
   0x5   :  { %s1167_s25 = scalar_lea.vmem %s33_s22, 256  ;;  %p1172_p1 = scmp.lt.s32.totalorder %s33_s22, %s33_s22 }
   0x6   :  { %p1168_p0 = scmp.ne.s32.totalorder %s33_s22, %s1167_s25  ;;  %p1173_p2 = scmp.lt.s32.totalorder %s1167_s25, %s1167_s25 }
   0x8   :  { %p1174_p3 = por %p1173_p2, %p1172_p1 }
   0xa   :  { %p1175_p4 = pnand %p1174_p3, %p1168_p0 }
   0xc   :  { %1178 = shalt.err (!%p1175_p4)
}
   0xd   :  { %s1289_s26 = smov 128   ;;  %s1290_s27 = smov 8  }
   0xe   :  { %38 = dma.hbm_to_vmem [thread:$0]  %s1568_s1, 256, %s33_s22, [#allocation6], %s1289_s26, %s1289_s26, %s1290_s27  }
   0xf   :  { %s1187_s30 = scalar_lea.vmem %s57_s24, 256  ;;  %p1192_p6 = scmp.lt.s32.totalorder %s57_s24, %s57_s24 }
  0x10   :  { %p1188_p5 = scmp.ne.s32.totalorder %s57_s24, %s1187_s30  ;;  %p1193_p7 = scmp.lt.s32.totalorder %s1187_s30, %s1187_s30 }
  0x12   :  { %p1194_p8 = por %p1193_p7, %p1192_p6 }
  0x14   :  { %p1195_p9 = pnand %p1194_p8, %p1188_p5 }
  0x16   :  { %1198 = shalt.err (!%p1195_p9)
}
  0x17   :  { %62 = dma.hbm_to_vmem [thread:$0]  %s1571_s4, 256, %s57_s24, [#allocation9], %s1289_s26, %s1289_s26, %s1290_s27  }
  0x18   :  { %s1291_s9 = smov [#allocation2]   ;;  %s1292_s11 = smov [#allocation7]  }
  0x19   :  { %s20_s10 = sshll.u32 %s1291_s9, 4  ;;  %s45_s12 = sshll.u32 %s1292_s11, 4  ;;  %s21_s10 = int_to_ptr.vmem [resolvable:$true] %s20_s10  ;;  %s46_s12 = int_to_ptr.vmem [resolvable:$true] %s45_s12 }
  0x1a   :  { %s1207_s1 = scalar_lea.vmem %s21_s10, 6400  ;;  %p1212_p11 = scmp.lt.s32.totalorder %s21_s10, %s21_s10 }
  0x1b   :  { %p1208_p10 = scmp.ne.s32.totalorder %s21_s10, %s1207_s1  ;;  %p1213_p12 = scmp.lt.s32.totalorder %s1207_s1, %s1207_s1 }
  0x1d   :  { %p1214_p13 = por %p1213_p12, %p1212_p11 }
  0x1f   :  { %p1215_p0 = pnand %p1214_p13, %p1208_p10 }
  0x21   :  { %1218 = shalt.err (!%p1215_p0)
}
  0x22   :  { %26 = dma.hbm_to_vmem [thread:$0]  %s1567_s0, 6400, %s21_s10, [#allocation3], %s1289_s26, %s1289_s26, %s1290_s27  }
  0x23   :  { %s1227_s4 = scalar_lea.vmem %s46_s12, 64  ;;  %p1232_p2 = scmp.lt.s32.totalorder %s46_s12, %s46_s12 }
  0x24   :  { %p1228_p1 = scmp.ne.s32.totalorder %s46_s12, %s1227_s4  ;;  %p1233_p3 = scmp.lt.s32.totalorder %s1227_s4, %s1227_s4 }
  0x26   :  { %p1234_p4 = por %p1233_p3, %p1232_p2 }
  0x28   :  { %p1235_p5 = pnand %p1234_p4, %p1228_p1 }
  0x2a   :  { %1238 = shalt.err (!%p1235_p5)
}
  0x2b   :  { %48 = dma.hbm_to_vmem [thread:$0]  %s1569_s2, 64, %s46_s12, [#allocation6]  }
  0x2c   :  { %s1293_s17 = smov [#allocation10]  }
  0x2d   :  { %s68_s18 = sshll.u32 %s1293_s17, 4  ;;  %s69_s18 = int_to_ptr.vmem [resolvable:$true] %s68_s18 }
  0x2e   :  { %s1247_s19 = scalar_lea.vmem %s69_s18, 256  ;;  %p1252_p7 = scmp.lt.s32.totalorder %s69_s18, %s69_s18 }
  0x2f   :  { %p1248_p6 = scmp.ne.s32.totalorder %s69_s18, %s1247_s19  ;;  %p1253_p8 = scmp.lt.s32.totalorder %s1247_s19, %s1247_s19 }
  0x31   :  { %p1254_p9 = por %p1253_p8, %p1252_p7 }
  0x33   :  { %p1255_p10 = pnand %p1254_p9, %p1248_p6 }
  0x35   :  { %1258 = shalt.err (!%p1255_p10)
}
  0x36   :  { %74 = dma.hbm_to_vmem [thread:$0]  %s1572_s5, 256, %s69_s18, [#allocation9], %s1289_s26, %s1289_s26, %s1290_s27  }
  0x37   :  { %1279 = dma.done.wait [#allocation3], 6400  }
  0x38   :  { %1280 = vsyncadd [#allocation3], 4294960896 }
  0x39   :  { %1281 = dma.done.wait [#allocation6], 320  }
  0x3a   :  { %1282 = vsyncadd [#allocation6], 4294966976 }
  0x3b   :  { %1283 = dma.done.wait [#allocation9], 512  }
  0x3c   :  { %1284 = vsyncadd [#allocation9], 4294966784  ;;  %v106_v0 = vlaneseq  ;;  %v1294_v1 = vmov 0.0   ;;  %vm1295_vm0 = vmmov 0   ;;  %v1296_v2 = vmov 1983009808  }
  0x3d   :  { %1036 = vmatprep.subr.mxu1 %v1294_v1  ;;  %1060 = vmatprep.mubr.msk.f32.mxu1 %vm1295_vm0, %v1294_v1  ;;  %v185_v3 = vunpack.c.l.s4 %v1296_v2  ;;  %v105_v6 = vld [vmem:[#allocation2 + $0x58] sm:$0xff]  ;;  %v104_v7 = vld [vmem:[#allocation2 + $0x50] sm:$0xff]  ;;  %v103_v9 = vld [vmem:[#allocation2 + $0x48] sm:$0xff]  ;;  %s1297_s2 = smov 48   ;;  %vm110_vm1 = vcmask 785408   ;;  %s1298_s5 = smov 32  }
  0x3e   :  { %1063 = vmatprep.subr.mxu0 %v1294_v1  ;;  %1075 = vmatprep.mubr.msk.f32.mxu0 %vm1295_vm0, %v1294_v1  ;;  %v1373_v4 = vshrl.u32 %v106_v0, 7  ;;  %v102_v10 = vld [vmem:[#allocation2 + $0x40] sm:$0xff]  ;;  %v201_v12 = vld [vmem:[#allocation2 + $0x88] sm:$0xff]  ;;  %v101_v15 = vld [vmem:[#allocation2 + $0x38] sm:$0xff]  ;;  %vm194_vm2 = vcmask 130048   ;;  %vm206_vm3 = vcmask 392192  }
  0x3f   :  { %v186_v5 = vunpack.c.0.s8 %v185_v3  ;;  %1037 = vmatpush3.msra.mxu1 %v105_v6  ;;  %v92_v11 = vld [vmem:[#allocation7] sm:$0x3]  ;;  %1064 = vmatpush3.msra.mxu0 %v201_v12  ;;  %v199_v16 = vld [vmem:[#allocation2 + $0x78] sm:$0xff]  ;;  %v100_v17 = vld [vmem:[#allocation2 + $0x30] sm:$0xff]  ;;  %s1299_s21 = smov 64   ;;  %vm319_vm4 = vcmask 261120  }
  0x40   :  { %1038 = vmatprep.subr.mxu1 %v1294_v1  ;;  %v200_v14 = vld [vmem:[#allocation2 + $0x80] sm:$0xff]  ;;  %1065 = vmatprep.subr.mxu0 %v1294_v1  ;;  %v198_v18 = vld [vmem:[#allocation2 + $0x70] sm:$0xff]  ;;  %v99_v19 = vld [vmem:[#allocation2 + $0x28] sm:$0xff]  ;;  %v1404_v28 = vsub.s32 0, %v1373_v4  ;;  %v1414_v36 = vsub.s32 1, %v1373_v4  ;;  %vm333_vm5 = vcmask 523264  }
  0x41   :  { %v1376_v8 = vsub.s32 %v186_v5, %v1373_v4  ;;  %1039 = vmatpush3.msra.mxu1 %v104_v7  ;;  %1066 = vmatpush3.msra.mxu0 %v200_v14  ;;  %v98_v20 = vld [vmem:[#allocation2 + $0x20] sm:$0xff]  ;;  %v97_v21 = vld [vmem:[#allocation2 + $0x18] sm:$0xff]  ;;  %v96_v22 = vld [vmem:[#allocation2 + $0x10] sm:$0xff]  ;;  %v1300_v3 = vmov 1966171168   ;;  %v331_v6 = vsub.s32 2, %v1373_v4 }
  0x42   :  { %1040 = vmatprep.subr.mxu1 %v1294_v1  ;;  %1067 = vmatprep.subr.mxu0 %v1294_v1  ;;  %v95_v23 = vld [vmem:[#allocation2 + $0x8] sm:$0xff]  ;;  %v94_v24 = vld [vmem:[#allocation2] sm:$0xff]  ;;  %v1406_v29 = vld [vmem:[#allocation5] sm:$0xff]  ;;  %v411_v5 = vunpack.c.l.s4 %v1300_v3  ;;  %vm470_vm6 = vcmask 1041409   ;;  %vm473_vm7 = vcmask 58368   ;;  %vm633_vm8 = vcmask 517120  }
  0x43   :  { %1041 = vmatpush3.msra.mxu1 %v103_v9  ;;  %v190_v13 = vrot.slane %v92_v11, %v1376_v8  ;;  %1068 = vmatpush3.msra.mxu0 %v199_v16  ;;  %v197_v25 = vld [vmem:[#allocation2 + $0x68] sm:$0xff]  ;;  %v196_v26 = vld [vmem:[#allocation2 + $0x60] sm:$0xff]  ;;  %v109_v30 = vrot.slane %v1406_v29, %v1404_v28  ;;  %v205_v37 = vrot.slane %v1406_v29, %v1414_v36  ;;  %v326_v54 = vld [vmem:[#allocation2 + $0xb8] sm:$0xff]  ;;  %vm643_vm9 = vcmask 123904   ;;  %s1303_s24 = smov [#allocation11]  }
  0x44   :  { %1042 = vmatprep.subr.mxu1 %v1294_v1  ;;  %1069 = vmatprep.subr.mxu0 %v1294_v1  ;;  %v1398_v27 = vld.sshfl [vmem:[#allocation7 + $0x2] sm:$0x3 pattern:$0x76325410]  ;;  %v328_v52 = vld [vmem:[#allocation2 + $0xc8] sm:$0xff]  ;;  %v325_v55 = vld [vmem:[#allocation2 + $0xb0] sm:$0xff]  ;;  %v412_v7 = vunpack.c.0.s8 %v411_v5  ;;  %v332_v9 = vrot.slane %v1406_v29, %v331_v6 }
  0x45   :  { %1043 = vmatpush3.msra.mxu1 %v102_v10  ;;  %191 = vrot.lane.b32.xlu0 %v190_v13, %s1297_s2  ;;  %v327_v53 = vld [vmem:[#allocation2 + $0xc0] sm:$0xff]  ;;  %v324_v56 = vld [vmem:[#allocation2 + $0xa8] sm:$0xff]  ;;  %v322_v59 = vld [vmem:[#allocation2 + $0x98] sm:$0xff]  ;;  %vm624_vm10 = vcmask 1041408   ;;  %vm950_vm13 = vcmask 588800   ;;  %vm952_vm14 = vcmask 596992  }
  0x46   :  { %1044 = vmatprep.subr.mxu1 %v1294_v1  ;;  %1070 = vmatpush3.msra.mxu0 %v198_v18  ;;  %v323_v57 = vld [vmem:[#allocation2 + $0xa0] sm:$0xff]  ;;  %v321_v60 = vld [vmem:[#allocation2 + $0x90] sm:$0xff]  ;;  %v415_v10 = vsub.s32 %v412_v7, %v1373_v4  ;;  %s981_s25 = sshll.u32 %s1303_s24, 4  ;;  %s982_s25 = int_to_ptr.vmem [resolvable:$true] %s981_s25 }
  0x47   :  { %1045 = vmatpush3.msra.mxu1 %v101_v15  ;;  %1071 = vmatprep.subr.mxu0 %v1294_v1  ;;  %s1259_s26 = scalar_lea.vmem %s982_s25, 96  ;;  %p1264_p12 = scmp.lt.s32.totalorder %s982_s25, %s982_s25 }
  0x48   :  { %1046 = vmatprep.subr.mxu1 %v1294_v1  ;;  %1072 = vmatpush3.msra.mxu0 %v197_v25  ;;  %p1260_p11 = scmp.ne.s32.totalorder %s982_s25, %s1259_s26  ;;  %p1265_p13 = scmp.lt.s32.totalorder %s1259_s26, %s1259_s26 }
  0x49   :  { %1047 = vmatpush3.msra.mxu1 %v100_v17  ;;  %1073 = vmatprep.subr.mxu0 %v1294_v1  ;;  %v407_v17 = vld [vmem:[#allocation8] sm:$0xff] }
  0x4a   :  { %1048 = vmatprep.subr.mxu1 %v1294_v1  ;;  %1074 = vmatpush3.msra.mxu0 %v196_v26  ;;  %p1266_p0 = por %p1265_p13, %p1264_p12 }
  0x4b   :  { %1049 = vmatpush3.msra.mxu1 %v99_v19  ;;  %692 = vmatprep.subr.mxu0 %v1294_v1 }
  0x4c   :  { %1050 = vmatprep.subr.mxu1 %v1294_v1  ;;  %295 = vrot.lane.b32.xlu1 %v1398_v27, %s1298_s5  ;;  %p1267_p1 = pnand %p1266_p0, %p1260_p11 }
  0x4d   :  { %1051 = vmatpush3.msra.mxu1 %v98_v20  ;;  %v408_v20 = vld [vmem:[#allocation8 + $0x8] sm:$0xff] }
  0x4e   :  { %1052 = vmatprep.subr.mxu1 %v1294_v1 }
  0x4f   :  { %1053 = vmatpush3.msra.mxu1 %v97_v21 }
  0x50   :  { %1054 = vmatprep.subr.mxu1 %v1294_v1 }
  0x51   :  { %1055 = vmatpush3.msra.mxu1 %v96_v22 }
  0x52   :  { %1056 = vmatprep.subr.mxu1 %v1294_v1 }
  0x53   :  { %1057 = vmatpush3.msra.mxu1 %v95_v23 }
  0x54   :  { %1058 = vmatprep.subr.mxu1 %v1294_v1 }
  0x55   :  { %1059 = vmatpush3.msra.mxu1 %v94_v24  ;;  %v448_v24 = vsub.s32 3, %v1373_v4 }
  0x56   :  { %1061 = vmatmul.mubr.msk.f32.vlgmr.msra.gmra.mxu1 %vm110_vm1, %v92_v11  ;;  %1078 = vmatprep.subr.mxu1 %v1294_v1 }
  0x57   :  { %1094 = vmatprep.mubr.msk.f32.mxu1 %vm1295_vm0, %v1294_v1  ;;  %1079 = vmatpush3.msra.mxu1 %v328_v52  ;;  %v449_v25 = vrot.slane %v1406_v29, %v448_v24 }
  0x58   :  { %1080 = vmatprep.subr.mxu1 %v1294_v1 }
  0x59   :  { %1081 = vmatpush3.msra.mxu1 %v327_v53 }
  0x5a   :  { %1082 = vmatprep.subr.mxu1 %v1294_v1 }
  0x5b   :  { %1083 = vmatpush3.msra.mxu1 %v326_v54  ;;  %v533_v54 = vrot.slane %v1398_v27, %v1404_v28 }
  0x5c   :  { %1084 = vmatprep.subr.mxu1 %v1294_v1 }
  0x5d   :  { %1085 = vmatpush3.msra.mxu1 %v325_v55  ;;  %v541_v55 = vrot.slane %v1398_v27, %v1414_v36 }
  0x5e   :  { %1086 = vmatprep.subr.mxu1 %v1294_v1 }
  0x5f   :  { %1087 = vmatpush3.msra.mxu1 %v324_v56 }
  0x60   :  { %1088 = vmatprep.subr.mxu1 %v1294_v1 }
  0x61   :  { %1089 = vmatpush3.msra.mxu1 %v323_v57 }
  0x62   :  { %1090 = vmatprep.subr.mxu1 %v1294_v1 }
  0x63   :  { %1091 = vmatpush3.msra.mxu1 %v322_v59 }
  0x64   :  { %1092 = vmatprep.subr.mxu1 %v1294_v1 }
  0x65   :  { %1093 = vmatpush3.msra.mxu1 %v321_v60 }
  0x66   :  { %1097 = vmatprep.subr.mxu1 %v1294_v1 }
  0xb7   :  { %v192_v32 = vpop.permute.xlu0 %191 }
  0xbe   :  { %v296_v48 = vpop.permute.xlu1 %295 }
 0x116   :  { %v180_v31 = vpop.f32.mrf.mxu1 }
 0x117   :  { %v1410_v33 = vadd.f32 %v180_v31, %v109_v30 }
 0x118   :  { %v1062_v34 = vpop.f32.mrf.mxu1 }
 0x119   :  { %v195_v35 = vsel %vm194_vm2, %v1410_v33, %v192_v32 }
 0x11a   :  { %1076 = vmatmul.mubr.msk.f32.vlgmr.msra.gmra.mxu0 %vm206_vm3, %v195_v35 }
 0x1da   :  { %v276_v38 = vpop.f32.mrf.mxu0 }
 0x1db   :  { %v277_v39 = vadd.f32 %v276_v38, %v205_v37  ;;  %v1450_v37 = vand.u32 127, %v106_v0 }
 0x1dc   :  { %v1077_v40 = vpop.f32.mrf.mxu0 }
 0x1dd   :  { %1127 = vtanh.f32 %v277_v39  ;;  %v994_v42 = vmul.f32 -1.442695, %v277_v39  ;;  %v1454_v38 = vsub.s32 %v1450_v37, %v1373_v4 }
 0x1df   :  { %1129 = vpow2.f32 %v994_v42 }
 0x1ea   :  { %v1128_v41 = vpop.eup %1127 }
 0x1eb   :  { %300 = vrot.lane.b32.xlu0 %v1128_v41, %s1299_s21 }
 0x1ec   :  { %v1130_v43 = vpop.eup %1129 }
 0x1ed   :  { %v283_v44 = vadd.f32 1.0, %v1130_v43 }
 0x1ef   :  { %1131 = vrcp.f32 %v283_v44 }
 0x1fc   :  { %v1132_v45 = vpop.eup %1131 }
 0x1fd   :  { %v298_v49 = vmul.f32 %v1132_v45, %v296_v48 }
 0x25d   :  { %v301_v46 = vpop.permute.xlu0 %300 }
 0x25e   :  { %v303_v47 = vmul.f32 %v1132_v45, %v301_v46 }
 0x260   :  { %305 = vrot.lane.b32.xlu1 %v303_v47, %s1298_s5 }
 0x2d2   :  { %v306_v50 = vpop.permute.xlu1 %305 }
 0x2d3   :  { %v308_v51 = vadd.f32 %v306_v50, %v298_v49 }
 0x2d5   :  { %1133 = vtanh.f32 %v308_v51 }
 0x2e2   :  { %v1134_v58 = vpop.eup %1133 }
 0x2e3   :  { %311 = vrot.lane.b32.xlu0 %v1134_v58, %s1299_s21 }
 0x355   :  { %v312_v61 = vpop.permute.xlu0 %311 }
 0x356   :  { %v314_v62 = vmul.f32 %v1132_v45, %v312_v61  ;;  %v1301_v45 = vmov 0  }
 0x357   :  { %1126 = vset.pattern.permute.xlu1 %v1301_v45  ;;  %1125 = vset.pattern.permute.xlu0 %v1301_v45  ;;  %v678_v45 = vld [vmem:[#allocation2 + $0x130] sm:$0xff] }
 0x358   :  { %316 = vrot.lane.b32.xlu1 %v314_v62, %s1298_s5 }
 0x3ca   :  { %v1430_v63 = vpop.permute.xlu1 %316 }
 0x3cb   :  { %v1434_v2 = vsel %vm319_vm4, %v1430_v63, %v308_v51 }
 0x3cc   :  { %1095 = vmatmul.mubr.msk.f32.vlgmr.msra.gmra.mxu1 %vm333_vm5, %v1434_v2 }
 0x3cd   :  { %1105 = vmatprep.mubr.msk.f32.mxu1 %vm1295_vm0, %v1294_v1 }
 0x48c   :  { %v403_v11 = vpop.f32.mrf.mxu1 }
 0x48d   :  { %v404_v12 = vadd.f32 %v403_v11, %v332_v9 }
 0x48e   :  { %v1096_v13 = vpop.f32.mrf.mxu1 }
 0x48f   :  { %v416_v14 = vrot.slane %v404_v12, %v415_v10 }
 0x491   :  { %v417_v15 = vcombine.high %v416_v14, %v416_v14  ;;  %v424_v16 = vrot.slane %v416_v14, %v415_v10  ;;  %v630_v14 = vsub.s32 7, %v1373_v4 }
 0x493   :  { %v431_v18 = vrot.slane %v417_v15, %v415_v10  ;;  %v435_v19 = vrot.slane %v424_v16, %v1404_v28 }
 0x495   :  { %v439_v21 = vrot.slane %v431_v18, %v1404_v28  ;;  %v442_v22 = vadd.f32 %v435_v19, %v407_v17  ;;  %v631_v18 = vrot.slane %v1406_v29, %v630_v14 }
 0x497   :  { %v443_v23 = vadd.f32 %v439_v21, %v408_v20  ;;  %1135 = vtanh.f32 %v442_v22  ;;  %v1476_v20 = vld [vmem:[#allocation5 + $0x8] sm:$0xff] }
 0x498   :  { %v641_v24 = vrot.slane %v1476_v20, %v1404_v28 }
 0x499   :  { %1137 = vtanh.f32 %v443_v23  ;;  %v632_v23 = vmul.f32 %v631_v18, %v1434_v2 }
 0x4a4   :  { %v1136_v26 = vpop.eup %1135 }
 0x4a5   :  { %v450_v30 = vmul.f32 %v1136_v26, %v449_v25  ;;  %v642_v26 = vmul.f32 %v641_v24, %v1410_v33  ;;  %v680_v33 = vld [vmem:[#allocation2 + $0x140] sm:$0xff] }
 0x4a6   :  { %v1138_v31 = vpop.eup %1137 }
 0x4a7   :  { %v452_v32 = vsel %vm333_vm5, %v450_v30, 0.0  ;;  %v451_v34 = vmul.f32 %v1138_v31, %v449_v25  ;;  %v634_v25 = vsel %vm633_vm8, %v632_v23, 0.0  ;;  %v644_v30 = vsel %vm643_vm9, %v642_v26, 0.0 }
 0x4a8   :  { %453 = vadd.xlane.f32.xlu0 %v452_v32 }
 0x4a9   :  { %v455_v35 = vsel %vm333_vm5, %v451_v34, 0.0 }
 0x4aa   :  { %456 = vadd.xlane.f32.xlu1 %v455_v35 }
 0x531   :  { %v454_v39 = vpop.xlane.xlu0 %453 }
 0x532   :  { %v465_v41 = vrot.slane %v454_v39, %v1454_v38 }
 0x533   :  { %v457_v40 = vpop.xlane.xlu1 %456 }
 0x534   :  { %v469_v42 = vrot.slane %v457_v40, %v1454_v38 }
 0x536   :  { %v471_v43 = vsel %vm470_vm6, %v469_v42, %v465_v41 }
 0x537   :  { %v474_v44 = vsel %vm473_vm7, %v471_v43, -inf  ;;  %v681_v43 = vld [vmem:[#allocation2 + $0x148] sm:$0xff] }
 0x538   :  { %475 = vmax.xlane.f32.xlu0 %v474_v44  ;;  %693 = vmatpush1.msra.mxu0 %v681_v43  ;;  %v679_v44 = vld [vmem:[#allocation2 + $0x138] sm:$0xff] }
 0x539   :  { %694 = vmatprep.subr.mxu0 %v1294_v1 }
 0x53a   :  { %695 = vmatpush1.msra.mxu0 %v680_v33 }
 0x53b   :  { %696 = vmatprep.subr.mxu0 %v1294_v1 }
 0x53c   :  { %697 = vmatpush1.msra.mxu0 %v679_v44 }
 0x53d   :  { %698 = vmatprep.subr.mxu0 %v1294_v1 }
 0x53e   :  { %699 = vmatpush1.msra.mxu0 %v678_v45 }
 0x53f   :  { %700 = vmatprep.subr.mxu0 %v1294_v1 }
 0x5c1   :  { %v476_v0 = vpop.xlane.xlu0 %475 }
 0x5c2   :  { %v481_v46 = vrot.slane %v476_v0, %v1404_v28  ;;  %v485_v47 = vrot.slane %v476_v0, %v1414_v36  ;;  %v677_v0 = vld [vmem:[#allocation2 + $0x128] sm:$0xff] }
 0x5c3   :  { %701 = vmatpush1.msra.mxu0 %v677_v0 }
 0x5c4   :  { %v488_v48 = vsub.f32 %v454_v39, %v481_v46  ;;  %v489_v49 = vsub.f32 %v457_v40, %v485_v47  ;;  %v676_v46 = vld [vmem:[#allocation2 + $0x120] sm:$0xff]  ;;  %702 = vmatprep.subr.mxu0 %v1294_v1  ;;  %v675_v47 = vld [vmem:[#allocation2 + $0x118] sm:$0xff] }
 0x5c5   :  { %703 = vmatpush1.msra.mxu0 %v676_v46 }
 0x5c6   :  { %v490_v50 = vmul.f32 1.442695, %v488_v48  ;;  %v492_v51 = vmul.f32 1.442695, %v489_v49  ;;  %704 = vmatprep.subr.mxu0 %v1294_v1  ;;  %v674_v48 = vld [vmem:[#allocation2 + $0x110] sm:$0xff]  ;;  %v673_v49 = vld [vmem:[#allocation2 + $0x108] sm:$0xff] }
 0x5c7   :  { %705 = vmatpush1.msra.mxu0 %v675_v47 }
 0x5c8   :  { %1139 = vpow2.f32 %v490_v50  ;;  %706 = vmatprep.subr.mxu0 %v1294_v1  ;;  %v672_v50 = vld [vmem:[#allocation2 + $0x100] sm:$0xff] }
 0x5c9   :  { %1141 = vpow2.f32 %v492_v51  ;;  %707 = vmatpush1.msra.mxu0 %v674_v48  ;;  %v671_v51 = vld [vmem:[#allocation2 + $0xf8] sm:$0xff] }
 0x5ca   :  { %708 = vmatprep.subr.mxu0 %v1294_v1 }
 0x5cb   :  { %709 = vmatpush1.msra.mxu0 %v673_v49 }
 0x5cc   :  { %710 = vmatprep.subr.mxu0 %v1294_v1 }
 0x5cd   :  { %711 = vmatpush1.msra.mxu0 %v672_v50  ;;  %v651_v50 = vrot.slane %v1476_v20, %v1414_v36 }
 0x5ce   :  { %712 = vmatprep.subr.mxu0 %v1294_v1 }
 0x5cf   :  { %713 = vmatpush1.msra.mxu0 %v671_v51 }
 0x5d0   :  { %714 = vmatprep.subr.mxu0 %v1294_v1 }
 0x5d5   :  { %v1140_v52 = vpop.eup %1139 }
 0x5d6   :  { %v1142_v53 = vpop.eup %1141  ;;  %497 = vperm.xlu0 %1125, %v1140_v52  }
 0x5d7   :  { %500 = vperm.xlu1 %1126, %v1142_v53  }
 0x5da   :  { %536 = vbcast.lane.b32.xlu0 %v533_v54, 288  ;;  %v668_v54 = vld [vmem:[#allocation2 + $0xe0] sm:$0xff] }
 0x5de   :  { %544 = vbcast.lane.b32.xlu0 %v541_v55, 288  ;;  %v667_v55 = vld [vmem:[#allocation2 + $0xd8] sm:$0xff] }
 0x651   :  { %v498_v56 = vpop.permute.xlu0 %497 }
 0x652   :  { %v501_v57 = vpop.permute.xlu1 %500  ;;  %v505_v58 = vrot.slane %v498_v56, %v1454_v38  ;;  %v666_v56 = vld [vmem:[#allocation2 + $0xd0] sm:$0xff] }
 0x653   :  { %v509_v59 = vrot.slane %v501_v57, %v1454_v38  ;;  %v685_v57 = vld [vmem:[#allocation2 + $0x168] sm:$0xff] }
 0x655   :  { %v510_v60 = vsel %vm470_vm6, %v509_v59, %v505_v58  ;;  %v537_v27 = vpop.permute.xlu0 %536  ;;  %v684_v58 = vld [vmem:[#allocation2 + $0x160] sm:$0xff]  ;;  %v683_v59 = vld [vmem:[#allocation2 + $0x158] sm:$0xff] }
 0x656   :  { %v512_v61 = vsel %vm473_vm7, %v510_v60, 0.0  ;;  %v587_v60 = vld [vmem:[#allocation10] sm:$0xff] }
 0x657   :  { %513 = vadd.xlane.f32.xlu1 %v512_v61 }
 0x659   :  { %v545_v10 = vpop.permute.xlu0 %544 }
 0x6e0   :  { %v514_v62 = vpop.xlane.xlu1 %513 }
 0x6e1   :  { %v519_v3 = vrot.slane %v514_v62, %v1404_v28  ;;  %v523_v5 = vrot.slane %v514_v62, %v1414_v36 }
 0x6e3   :  { %1143 = vrcp.f32 %v519_v3  ;;  %v588_v3 = vld [vmem:[#allocation10 + $0x8] sm:$0xff] }
 0x6e4   :  { %1145 = vrcp.f32 %v523_v5 }
 0x6f0   :  { %v1144_v6 = vpop.eup %1143 }
 0x6f1   :  { %v1146_v7 = vpop.eup %1145  ;;  %v527_v9 = vmul.f32 %v1144_v6, %v1140_v52  ;;  %v670_v52 = vld [vmem:[#allocation2 + $0xf0] sm:$0xff] }
 0x6f2   :  { %v529_v11 = vmul.f32 %v1146_v7, %v1142_v53  ;;  %v669_v53 = vld [vmem:[#allocation2 + $0xe8] sm:$0xff]  ;;  %715 = vmatpush1.msra.mxu0 %v670_v52 }
 0x6f3   :  { %v548_v12 = vmul.f32 %v537_v27, %v527_v9  ;;  %716 = vmatprep.subr.mxu0 %v1294_v1 }
 0x6f4   :  { %v549_v13 = vmul.f32 %v545_v10, %v529_v11  ;;  %717 = vmatpush1.msra.mxu0 %v669_v53  ;;  %v682_v11 = vld [vmem:[#allocation2 + $0x150] sm:$0xff] }
 0x6f5   :  { %553 = vperm.xlu0 %1125, %v548_v12   ;;  %718 = vmatprep.subr.mxu0 %v1294_v1 }
 0x6f6   :  { %556 = vperm.xlu1 %1126, %v549_v13   ;;  %719 = vmatpush1.msra.mxu0 %v668_v54  ;;  %v768_v54 = vsub.s32 5, %v1373_v4 }
 0x6f7   :  { %720 = vmatprep.subr.mxu0 %v1294_v1 }
 0x6f8   :  { %721 = vmatpush1.msra.mxu0 %v667_v55  ;;  %v769_v55 = vrot.slane %v1406_v29, %v768_v54 }
 0x6f9   :  { %722 = vmatprep.subr.mxu0 %v1294_v1 }
 0x6fa   :  { %723 = vmatpush1.msra.mxu0 %v666_v56 }
 0x6fb   :  { %748 = vmatprep.subr.mxu0 %v1294_v1 }
 0x6fc   :  { %749 = vmatpush2.msra.mxu0 %v685_v57 }
 0x6fd   :  { %750 = vmatprep.subr.mxu0 %v1294_v1 }
 0x6fe   :  { %751 = vmatpush2.msra.mxu0 %v684_v58 }
 0x6ff   :  { %752 = vmatprep.subr.mxu0 %v1294_v1 }
 0x700   :  { %753 = vmatpush2.msra.mxu0 %v683_v59 }
 0x701   :  { %754 = vmatprep.subr.mxu0 %v1294_v1 }
 0x702   :  { %755 = vmatpush2.msra.mxu0 %v682_v11 }
 0x770   :  { %v554_v15 = vpop.permute.xlu0 %553 }
 0x771   :  { %v557_v16 = vpop.permute.xlu1 %556  ;;  %v561_v17 = vrot.slane %v554_v15, %v1454_v38 }
 0x772   :  { %v565_v19 = vrot.slane %v557_v16, %v1454_v38 }
 0x774   :  { %v566_v21 = vsel %vm470_vm6, %v565_v19, %v561_v17 }
 0x775   :  { %v568_v22 = vsel %vm473_vm7, %v566_v21, 0.0 }
 0x776   :  { %569 = vadd.xlane.f32.xlu0 %v568_v22  ;;  %v615_v22 = vsub.s32 6, %v1373_v4 }
 0x778   :  { %v616_v23 = vrot.slane %v1406_v29, %v615_v22 }
 0x77a   :  { %635 = vadd.xlane.f32.xlu0 %v634_v25 }
 0x77e   :  { %645 = vadd.xlane.f32.xlu0 %v644_v30 }
 0x7ff   :  { %v570_v31 = vpop.xlane.xlu0 %569 }
 0x800   :  { %v571_v32 = vadd.f32 1e-12, %v570_v31 }
 0x802   :  { %v576_v34 = vrot.slane %v571_v32, %v1404_v28  ;;  %v580_v35 = vrot.slane %v571_v32, %v1414_v36  ;;  %v765_v32 = vld [vmem:[#allocation2 + $0x188] sm:$0xff] }
 0x803   :  { %1098 = vmatpush3.msra.mxu1 %v765_v32  ;;  %v636_v46 = vpop.xlane.xlu0 %635 }
 0x804   :  { %1147 = vrcp.f32 %v576_v34  ;;  %v764_v34 = vld [vmem:[#allocation2 + $0x180] sm:$0xff]  ;;  %1099 = vmatprep.subr.mxu1 %v1294_v1 }
 0x805   :  { %1149 = vrcp.f32 %v580_v35  ;;  %1100 = vmatpush3.msra.mxu1 %v764_v34 }
 0x806   :  { %1101 = vmatprep.subr.mxu1 %v1294_v1 }
 0x807   :  { %v646_v49 = vpop.xlane.xlu0 %645 }
 0x811   :  { %v1148_v39 = vpop.eup %1147 }
 0x812   :  { %v584_v40 = vmul.f32 %v1148_v39, %v548_v12  ;;  %v1150_v41 = vpop.eup %1149 }
 0x813   :  { %v586_v42 = vmul.f32 %v1150_v41, %v549_v13  ;;  %v762_v41 = vld [vmem:[#allocation2 + $0x170] sm:$0xff] }
 0x814   :  { %591 = vperm.xlu1 %1126, %v584_v40   ;;  %v763_v40 = vld [vmem:[#allocation2 + $0x178] sm:$0xff] }
 0x815   :  { %1102 = vmatpush3.msra.mxu1 %v763_v40 }
 0x816   :  { %1103 = vmatprep.subr.mxu1 %v1294_v1 }
 0x817   :  { %1104 = vmatpush3.msra.mxu1 %v762_v41 }
 0x818   :  { %596 = vperm.xlu1 %1126, %v586_v42   ;;  %v688_v42 = vsub.s32 4, %v1373_v4 }
 0x81a   :  { %v689_v43 = vrot.slane %v1406_v29, %v688_v42 }
 0x88f   :  { %v1505_v61 = vpop.permute.xlu1 %591 }
 0x890   :  { %v599_v62 = vmul.f32 %v1505_v61, %v587_v60 }
 0x892   :  { %v601_v5 = vrot.slane %v599_v62, 4 }
 0x893   :  { %v1508_v27 = vpop.permute.xlu1 %596 }
 0x894   :  { %v602_v6 = vadd.f32 %v601_v5, %v599_v62  ;;  %v600_v7 = vmul.f32 %v1508_v27, %v588_v3  ;;  %v888_v29 = vrot.slane %v1508_v27, %v1454_v38 }
 0x896   :  { %v603_v9 = vrot.slane %v602_v6, 2  ;;  %v607_v10 = vrot.slane %v600_v7, 4 }
 0x898   :  { %v604_v12 = vadd.f32 %v603_v9, %v602_v6  ;;  %v608_v13 = vadd.f32 %v607_v10, %v600_v7  ;;  %v884_v10 = vrot.slane %v1505_v61, %v1454_v38 }
 0x89a   :  { %v609_v14 = vrot.slane %v608_v13, 2  ;;  %v605_v16 = vrot.slane %v604_v12, 1  ;;  %v889_v11 = vsel %vm470_vm6, %v888_v29, %v884_v10 }
 0x89c   :  { %v610_v15 = vadd.f32 %v609_v14, %v608_v13  ;;  %v606_v18 = vadd.f32 %v605_v16, %v604_v12 }
 0x89e   :  { %v611_v17 = vrot.slane %v610_v15, 1  ;;  %v617_v26 = vmul.f32 %v616_v23, %v606_v18 }
 0x8a0   :  { %v612_v19 = vadd.f32 %v611_v17, %v610_v15 }
 0x8a2   :  { %v1512_v21 = vsel %vm470_vm6, %v612_v19, %v606_v18  ;;  %v618_v24 = vmul.f32 %v616_v23, %v612_v19 }
 0x8a3   :  { %662 = vrot.lane.b32.xlu1 %v1512_v21, %s1298_s5 }
 0x8a4   :  { %v621_v25 = vrot.slane %v618_v24, 7 }
 0x8a6   :  { %v622_v30 = vsel %vm470_vm6, %v621_v25, %v617_v26 }
 0x8a7   :  { %v625_v31 = vsel %vm624_vm10, %v622_v30, 0.0 }
 0x8c7   :  { %626 = vadd.xlane.f32.xlu1 %v625_v31 }
 0x915   :  { %v663_v35 = vpop.permute.xlu1 %662 }
 0x916   :  { %v665_v39 = vsel %vm319_vm4, %v1430_v63, %v663_v35  ;;  %998 = vmatprep.mubr.msk.f32.mxu0 %vm319_vm4, %v663_v35  ;;  %v854_v63 = vld [vmem:[%s1570_s3] sm:$0x3]  ;;  %s1302_s3 = smov 72   ;;  %v934_v35 = vadd.s32 4294967232, %v1450_v37 }
 0x917   :  { %757 = vmatmul.mubr.f32.vlgmr.msra.gmra.mxu0 %v665_v39  ;;  %v865_v0 = vrot.slane %v854_v63, %v1414_v36  ;;  %v858_v20 = vrot.slane %v854_v63, %v1404_v28 }
 0x918   :  { %v937_v42 = vsub.s32 %v934_v35, %v1373_v4 }
 0x919   :  { %867 = vbcast.lane.b32.xlu1 %v865_v0, 256 }
 0x950   :  { %v627_v47 = vpop.xlane.xlu1 %626 }
 0x951   :  { %v637_v48 = vadd.f32 %v636_v46, %v627_v47 }
 0x953   :  { %v647_v51 = vadd.f32 %v646_v49, %v637_v48 }
 0x955   :  { %v652_v52 = vadd.f32 %v651_v50, %v647_v51 }
 0x957   :  { %v997_v53 = vmul.f32 -1.442695, %v652_v52 }
 0x959   :  { %1151 = vpow2.f32 %v997_v53 }
 0x966   :  { %v1152_v57 = vpop.eup %1151 }
 0x967   :  { %v656_v62 = vadd.f32 1.0, %v1152_v57 }
 0x969   :  { %1153 = vrcp.f32 %v656_v62 }
 0x976   :  { %v1154_v3 = vpop.eup %1153 }
 0x977   :  { %v875_v5 = vsub.f32 1.0, %v1154_v3 }
 0x98b   :  { %v868_v19 = vpop.permute.xlu1 %867 }
 0x98c   :  { %vm870_vm11 = vcmp.eq.s32.totalorder %v868_v19, %v1450_v37 }
 0x98d   :  { %v1001_v22 = vsel %vm870_vm11, 1.0, %v1294_v1 }
 0x9d7   :  { %v758_v33 = vpop.f32.mrf.mxu0 }
 0x9d8   :  { %v759_v44 = vadd.f32 %v758_v33, %v689_v43 }
 0x9d9   :  { %v760_v45 = vpop.f32.mrf.mxu0 }
 0x9da   :  { %1106 = vmatmul.mubr.msk.f32.vlgmr.msra.gmra.mxu1 %vm319_vm4, %v759_v44  ;;  %v938_v44 = vrot.slane %v1505_v61, %v937_v42 }
 0xa9a   :  { %v839_v56 = vpop.f32.mrf.mxu1 }
 0xa9b   :  { %v840_v58 = vadd.f32 %v839_v56, %v769_v55 }
 0xa9c   :  { %v1107_v59 = vpop.f32.mrf.mxu1 }
 0xa9d   :  { %v843_v60 = vsel %vm624_vm10, %v840_v58, -inf }
 0xa9e   :  { %844 = vmax.xlane.f32.xlu0 %v843_v60 }
 0xab4   :  { %878 = vperm.xlu0 %1125, %v875_v5  }
 0xab8   :  { %860 = vbcast.lane.b32.xlu0 %v858_v20, 256 }
 0xb27   :  { %v845_v6 = vpop.xlane.xlu0 %844 }
 0xb28   :  { %v846_v7 = vsub.f32 %v840_v58, %v845_v6 }
 0xb2a   :  { %v847_v9 = vmul.f32 1.442695, %v846_v7 }
 0xb2c   :  { %1155 = vpow2.f32 %v847_v9 }
 0xb2f   :  { %v879_v12 = vpop.permute.xlu0 %878 }
 0xb30   :  { %v891_v13 = vmul.f32 %v889_v11, %v879_v12 }
 0xb32   :  { %v901_v14 = vrot.slane %v891_v13, %v1404_v28  ;;  %v908_v15 = vrot.slane %v891_v13, %v1414_v36 }
 0xb33   :  { %v861_v38 = vpop.permute.xlu0 %860 }
 0xb34   :  { %903 = vbcast.lane.b32.xlu0 %v901_v14, 256  ;;  %vm869_vm12 = vcmp.eq.s32.totalorder %v861_v38, %v1450_v37 }
 0xb35   :  { %v1000_v36 = vsel %vm869_vm12, 1.0, %v1294_v1  ;;  %v942_v1 = vrot.slane %v1508_v27, %v937_v42 }
 0xb37   :  { %v943_v47 = vsel %vm470_vm6, %v942_v1, %v938_v44 }
 0xb38   :  { %910 = vbcast.lane.b32.xlu0 %v908_v15, 256 }
 0xb39   :  { %v1156_v16 = vpop.eup %1155 }
 0xb3a   :  { %v849_v17 = vsel %vm624_vm10, %v1156_v16, 0.0 }
 0xb3b   :  { %850 = vadd.xlane.f32.xlu1 %v849_v17 }
 0xb3c   :  { %894 = vperm.xlu0 %1125, %v1154_v3  }
 0xb40   :  { %931 = vrot.lane.b32.xlu0 %v1512_v21, %s1299_s21 }
 0xb4c   :  { %945 = vrot.lane.b32.xlu1 %v1154_v3, %s1302_s3 }
 0xba6   :  { %v904_v18 = vpop.permute.xlu0 %903 }
 0xba7   :  { %v912_v24 = vmul.f32 %v1000_v36, %v904_v18 }
 0xba9   :  { %v914_v26 = vrot.slane %v912_v24, 4 }
 0xbaa   :  { %v911_v28 = vpop.permute.xlu0 %910 }
 0xbab   :  { %v913_v23 = vmul.f32 %v1001_v22, %v911_v28  ;;  %v915_v21 = vadd.f32 %v914_v26, %v912_v24 }
 0xbad   :  { %v920_v25 = vrot.slane %v913_v23, 4  ;;  %v916_v34 = vrot.slane %v915_v21, 2 }
 0xbaf   :  { %v921_v30 = vadd.f32 %v920_v25, %v913_v23  ;;  %v917_v41 = vadd.f32 %v916_v34, %v915_v21 }
 0xbb1   :  { %v922_v32 = vrot.slane %v921_v30, 2  ;;  %v918_v33 = vrot.slane %v917_v41, 1 }
 0xbb3   :  { %v923_v39 = vadd.f32 %v922_v32, %v921_v30  ;;  %v919_v37 = vadd.f32 %v918_v33, %v917_v41 }
 0xbb5   :  { %v924_v43 = vrot.slane %v923_v39, 1 }
 0xbb7   :  { %v895_v40 = vpop.permute.xlu0 %894  ;;  %v925_v0 = vadd.f32 %v924_v43, %v923_v39 }
 0xbb9   :  { %v928_v51 = vsel %vm470_vm6, %v925_v0, %v919_v37 }
 0xbbb   :  { %v932_v45 = vpop.permute.xlu0 %931 }
 0xbbc   :  { %v949_v49 = vsel %vm333_vm5, %v932_v45, %v943_v47  ;;  %v948_v61 = vsel %vm333_vm5, %v1434_v2, %v932_v45 }
 0xbc4   :  { %v851_v31 = vpop.xlane.xlu1 %850 }
 0xbc5   :  { %1157 = vrcp.f32 %v851_v31 }
 0xbc8   :  { %v946_v46 = vpop.permute.xlu1 %945 }
 0xbc9   :  { %v951_v50 = vsel %vm950_vm13, %v949_v49, %v946_v46 }
 0xbca   :  { %v953_v52 = vsel %vm952_vm14, %v951_v50, 0.0 }
 0xbcb   :  { %v971_v54 = vrot.slane %v953_v52, %v1376_v8 }
 0xbd2   :  { %v1158_v63 = vpop.eup %1157 }
 0xbd3   :  { %v853_v48 = vmul.f32 %v1158_v63, %v1156_v16 }
 0xbd5   :  { %v897_v4 = vmul.f32 %v895_v40, %v853_v48 }
 0xbd7   :  { %v930_v27 = vadd.f32 %v928_v51, %v897_v4 }
 0xbd9   :  { %v957_v53 = vcombine.low %v930_v27, %v948_v61 }
 0xbdb   :  { %v964_v55 = vrot.slane %v957_v53, %v1376_v8 }
 0xbdd   :  { %v972_v56 = vcombine.low %v964_v55, %v971_v54 }
 0xbdf   :  { %974 = vst [vmem:[#allocation11] sm:$0x3f] %v972_v56 }
 0xbe0   :  { %1270 = shalt.err (!%p1267_p1)
}
 0xbe1   :  { %984 = dma.vmem_to_hbm [thread:$0]  %s982_s25, 96, %s1573_s6, [#allocation4]  }
 0xbe2   :  { %1285 = dma.done.wait [#allocation4], 96  }
 0xbe3   :  { %1286 = vsyncadd [#allocation4], 4294967200 }
 0xbe4   :  { %988 = vsyncpa [#allocation3], 1 }
 0xbe5   :  { %989 = vsyncpa [#allocation6], 1 }
 0xbe6   :  { %990 = vsyncpa [#allocation9], 1 }
 0xbe7   :  { %991 = vsyncpa [#allocation4], 1 }

</bundles_post_ra>
